<compile_context>
chip_gen: v6e
topology: v6e:2x2x1
jax: 0.10.0
libtpu: 0.0.40
codegen_flags: <defaults>
</compile_context>

<pallas_src>
import math
from functools import lru_cache, partial

import jax
import jax.numpy as jnp
from jax.experimental import pallas as pl
from jax.experimental.pallas import tpu as pltpu

PRELU_ALPHA = 0.25          # torch nn.PReLU() default init
BN_EPS = 1e-5               # torch nn.BatchNorm2d default eps
VMEM_LIMIT = 32 * 1024 * 1024   # safe on v5e/v6e (128 MiB) and v7x (64 MiB)


def _round_up(x, m):
    return ((x + m - 1) // m) * m


def _pick_tile(dim, target, align):
    """Largest tile <= target; if dim < target use the whole (aligned) dim."""
    if dim >= target:
        return target
    return _round_up(dim, align)


def _apply_act(y, act, alpha):
    if act == "relu":
        return jnp.maximum(y, 0.0)
    if act == "prelu":
        return jnp.where(y > 0.0, y, alpha * y)
    if act == "sigmoid":
        z = jnp.clip(y, -60.0, 60.0)
        s = pl.reciprocal(1.0 + jnp.exp(-z), approx=True)   # EUP slot
        return jnp.clip(s, 0.0, 1.0)
    return y


# ----------------------------------------------------------------------------
# Pallas kernels
# ----------------------------------------------------------------------------
def _mm_kernel(a_ref, w_ref, s_ref, b_ref, o_ref, acc_ref, *, act, alpha):
    @pl.when(pl.program_id(2) == 0)
    def _():
        acc_ref[...] = jnp.zeros_like(acc_ref)
    acc_ref[...] += jnp.dot(a_ref[...], w_ref[...],
                            preferred_element_type=jnp.float32)

    @pl.when(pl.program_id(2) == pl.num_programs(2) - 1)
    def _():
        y = acc_ref[...] * s_ref[...] + b_ref[...]
        o_ref[...] = _apply_act(y, act, alpha).astype(o_ref.dtype)


def _mm_kernel_res(a_ref, w_ref, s_ref, b_ref, r_ref, o_ref, acc_ref, *,
                   act, alpha):
    @pl.when(pl.program_id(2) == 0)
    def _():
        acc_ref[...] = jnp.zeros_like(acc_ref)
    acc_ref[...] += jnp.dot(a_ref[...], w_ref[...],
                            preferred_element_type=jnp.float32)

    @pl.when(pl.program_id(2) == pl.num_programs(2) - 1)
    def _():
        y = acc_ref[...] * s_ref[...] + b_ref[...] + r_ref[...].astype(jnp.float32)
        o_ref[...] = _apply_act(y, act, alpha).astype(o_ref.dtype)


@lru_cache(maxsize=None)
def _mm_call(Mp, Kp, Np, tm, tk, tn, act, alpha, has_res, out_dtype_name):
    grid = (Mp // tm, Np // tn, Kp // tk)
    kern = partial(_mm_kernel_res if has_res else _mm_kernel, act=act, alpha=alpha)
    in_specs = [
        pl.BlockSpec((tm, tk), lambda i, j, k: (i, k)),   # A  (bf16)
        pl.BlockSpec((tk, tn), lambda i, j, k: (k, j)),   # W  (bf16)
        pl.BlockSpec((1, tn), lambda i, j, k: (0, j)),    # scale (f32)
        pl.BlockSpec((1, tn), lambda i, j, k: (0, j)),    # shift (f32)
    ]
    if has_res:
        in_specs.append(pl.BlockSpec((tm, tn), lambda i, j, k: (i, j)))  # skip
    return pl.pallas_call(
        kern,
        out_shape=jax.ShapeDtypeStruct((Mp, Np), jnp.dtype(out_dtype_name)),
        grid=grid,
        in_specs=in_specs,
        out_specs=pl.BlockSpec((tm, tn), lambda i, j, k: (i, j)),
        scratch_shapes=[pltpu.VMEM((tm, tn), jnp.float32)],
        compiler_params=pltpu.CompilerParams(
            dimension_semantics=("parallel", "parallel", "arbitrary"),
            vmem_limit_bytes=VMEM_LIMIT),
    )


def matmul_affine_act(a, w, scale, shift, residual=None, act="none",
                      alpha=PRELU_ALPHA, out_dtype=jnp.bfloat16):
    """out = act((a @ w) * scale + shift [+ residual]), tiled Pallas matmul."""
    M, K = a.shape
    _, N = w.shape
    tm = _pick_tile(M, 256, 8)
    tk = _pick_tile(K, 512, 128)
    tn = _pick_tile(N, 256, 128)
    Mp, Kp, Np = _round_up(M, tm), _round_up(K, tk), _round_up(N, tn)

    a_p = a.astype(jnp.bfloat16)
    if (Mp, Kp) != (M, K):
        a_p = jnp.pad(a_p, ((0, Mp - M), (0, Kp - K)))
    w_p = w.astype(jnp.bfloat16)
    if (Kp, Np) != (K, N):
        w_p = jnp.pad(w_p, ((0, Kp - K), (0, Np - N)))
    s_p = jnp.pad(scale.astype(jnp.float32), (0, Np - N)).reshape(1, Np)
    b_p = jnp.pad(shift.astype(jnp.float32), (0, Np - N)).reshape(1, Np)

    has_res = residual is not None
    args = [a_p, w_p, s_p, b_p]
    if has_res:
        r_p = residual.astype(jnp.bfloat16)
        if (Mp, Np) != (M, N):
            r_p = jnp.pad(r_p, ((0, Mp - M), (0, Np - N)))
        args.append(r_p)

    out = _mm_call(Mp, Kp, Np, tm, tk, tn, act, float(alpha), has_res,
                   jnp.dtype(out_dtype).name)(*args)
    if (Mp, Np) != (M, N):
        out = out[:M, :N]
    return out


def _affine_kernel(x_ref, s_ref, b_ref, o_ref, *, act, alpha):
    y = x_ref[...].astype(jnp.float32) * s_ref[...] + b_ref[...]
    o_ref[...] = _apply_act(y, act, alpha).astype(o_ref.dtype)


@lru_cache(maxsize=None)
def _affine_call(Mp, Cp, tm, act, alpha, out_dtype_name):
    return pl.pallas_call(
        partial(_affine_kernel, act=act, alpha=alpha),
        out_shape=jax.ShapeDtypeStruct((Mp, Cp), jnp.dtype(out_dtype_name)),
        grid=(Mp // tm,),
        in_specs=[pl.BlockSpec((tm, Cp), lambda i: (i, 0)),
                  pl.BlockSpec((1, Cp), lambda i: (0, 0)),
                  pl.BlockSpec((1, Cp), lambda i: (0, 0))],
        out_specs=pl.BlockSpec((tm, Cp), lambda i: (i, 0)),
        compiler_params=pltpu.CompilerParams(
            dimension_semantics=("parallel",),
            vmem_limit_bytes=VMEM_LIMIT),
    )


def affine_act(x, scale, shift, act="none", alpha=PRELU_ALPHA,
               out_dtype=jnp.bfloat16):
    """Row-tiled elementwise x*scale+shift + activation (per-channel)."""
    shape = x.shape
    C = shape[-1]
    x2 = x.reshape(-1, C)
    M = x2.shape[0]
    Cp = _round_up(C, 128)
    tm = _pick_tile(M, 1024, 8)
    Mp = _round_up(M, tm)
    xp = x2 if (Mp, Cp) == (M, C) else jnp.pad(x2, ((0, Mp - M), (0, Cp - C)))
    s_p = jnp.pad(scale.astype(jnp.float32), (0, Cp - C)).reshape(1, Cp)
    b_p = jnp.pad(shift.astype(jnp.float32), (0, Cp - C)).reshape(1, Cp)
    out = _affine_call(Mp, Cp, tm, act, float(alpha),
                       jnp.dtype(out_dtype).name)(xp, s_p, b_p)
    return out[:M, :C].reshape(shape)


# ----------------------------------------------------------------------------
# Conv / pooling glue (data rearrangement only; all MACs run in the Pallas mm)
# ----------------------------------------------------------------------------
def conv2d(x, w, stride=(1, 1), padding=((0, 0), (0, 0)), dilation=(1, 1),
           scale=None, shift=None, residual=None, act="none",
           alpha=PRELU_ALPHA, out_dtype=jnp.bfloat16):
    N, H, W, Cin = x.shape
    kh, kw, _, Cout = w.shape
    sh, sw = stride
    dh, dw = dilation
    (ph0, ph1), (pw0, pw1) = padding

    if (kh, kw) == (1, 1) and stride == (1, 1) and padding == ((0, 0), (0, 0)):
        # 1x1 conv: no im2col, just a reshape.
        Ho, Wo = H, W
        a = x.reshape(N * H * W, Cin)
    else:
        xp = jnp.pad(x, ((0, 0), (ph0, ph1), (pw0, pw1), (0, 0)))
        Hp, Wp = H + ph0 + ph1, W + pw0 + pw1
        Ho = (Hp - (dh * (kh - 1) + 1)) // sh + 1
        Wo = (Wp - (dw * (kw - 1) + 1)) // sw + 1
        patches = []
        for i in range(kh):
            for j in range(kw):
                sl = xp[:, i * dh: i * dh + (Ho - 1) * sh + 1: sh,
                        j * dw: j * dw + (Wo - 1) * sw + 1: sw, :]
                patches.append(sl)
        a = jnp.concatenate(patches, axis=-1).reshape(N * Ho * Wo, kh * kw * Cin)

    wm = w.reshape(kh * kw * Cin, Cout)
    if scale is None:
        scale = jnp.ones((Cout,), jnp.float32)
    if shift is None:
        shift = jnp.zeros((Cout,), jnp.float32)
    res2 = None if residual is None else residual.reshape(N * Ho * Wo, Cout)
    out = matmul_affine_act(a, wm, scale, shift, residual=res2, act=act,
                            alpha=alpha, out_dtype=out_dtype)
    return out.reshape(N, Ho, Wo, Cout)


def conv_transpose2d(x, w_pt, scale=None, shift=None, act="none",
                     alpha=PRELU_ALPHA, out_dtype=jnp.bfloat16):
    """ConvTranspose2d(k=3, stride=2, padding=1, output_padding=1) via the
    sub-pixel decomposition: 4 small convs whose outputs are interleaved."""
    Cin, Cout, kh, kw = w_pt.shape
    assert (kh, kw) == (3, 3)
    N, H, W, _ = x.shape
    w = jnp.transpose(w_pt, (2, 3, 0, 1))               # (ky, kx, Cin, Cout)

    w_ee = w[1:2, 1:2]                                                  # 1x1
    w_eo = jnp.stack([w[1, 2], w[1, 0]], axis=0)[None, :, :, :]         # 1x2
    w_oe = jnp.stack([w[2, 1], w[0, 1]], axis=0)[:, None, :, :]         # 2x1
    w_oo = jnp.stack([jnp.stack([w[2, 2], w[2, 0]], axis=0),
                      jnp.stack([w[0, 2], w[0, 0]], axis=0)], axis=0)   # 2x2

    kwargs = dict(scale=scale, shift=shift, act=act, alpha=alpha,
                  out_dtype=out_dtype)
    y_ee = conv2d(x, w_ee, **kwargs)
    y_eo = conv2d(x, w_eo, padding=((0, 0), (0, 1)), **kwargs)
    y_oe = conv2d(x, w_oe, padding=((0, 1), (0, 0)), **kwargs)
    y_oo = conv2d(x, w_oo, padding=((0, 1), (0, 1)), **kwargs)

    row_e = jnp.stack([y_ee, y_eo], axis=3).reshape(N, H, 2 * W, Cout)
    row_o = jnp.stack([y_oe, y_oo], axis=3).reshape(N, H, 2 * W, Cout)
    return jnp.stack([row_e, row_o], axis=2).reshape(N, 2 * H, 2 * W, Cout)


def maxpool2x2(x, return_indices=False):
    N, H, W, C = x.shape
    xr = x.reshape(N, H // 2, 2, W // 2, 2, C)
    xr = jnp.transpose(xr, (0, 1, 3, 2, 4, 5)).reshape(N, H // 2, W // 2, 4, C)
    val = jnp.max(xr, axis=3)
    if not return_indices:
        return val
    idx = jnp.argmax(xr, axis=3).astype(jnp.int32)
    return val, idx


def maxunpool2x2(x, idx):
    N, Ho, Wo, C = x.shape
    onehot = jax.nn.one_hot(idx, 4, dtype=x.dtype)        # (N,Ho,Wo,C,4)
    onehot = jnp.moveaxis(onehot, -1, 3)                  # (N,Ho,Wo,4,C)
    y = x[:, :, :, None, :] * onehot
    y = y.reshape(N, Ho, Wo, 2, 2, C)
    return jnp.transpose(y, (0, 1, 3, 2, 4, 5)).reshape(N, 2 * Ho, 2 * Wo, C)


# ----------------------------------------------------------------------------
# Deterministic parameter construction
# ----------------------------------------------------------------------------
class ParamGen:
    def __init__(self, seed=0):
        self.key = jax.random.PRNGKey(seed)

    def _next(self):
        self.key, sub = jax.random.split(self.key)
        return sub

    def normal(self, shape, std):
        return std * jax.random.normal(self._next(), shape, jnp.float32)

    def conv(self, kh, kw, cin, cout):
        return self.normal((kh, kw, cin, cout), 0.5 / math.sqrt(kh * kw * cin))

    def conv_t(self, cin, cout, kh, kw):
        return self.normal((cin, cout, kh, kw), 0.5 / math.sqrt(kh * kw * cin))

    def bn(self, c):
        gamma = 1.0 + self.normal((c,), 0.05)
        beta = self.normal((c,), 0.05)
        mean = self.normal((c,), 0.02)
        var = 1.0 + jnp.abs(self.normal((c,), 0.05))
        scale = gamma / jnp.sqrt(var + BN_EPS)
        shift = beta - mean * scale
        return scale, shift


def make_conv_bn(pg, kh, kw, cin, cout):
    w = pg.conv(kh, kw, cin, cout)
    scale, shift = pg.bn(cout)
    return {"w": w, "scale": scale, "shift": shift}


def make_initial_block(pg):
    return {"conv": pg.conv(3, 3, 3, 13), "bn": pg.bn(16)}


def make_regular(pg, cin, cout, dilation=1, relu=False):
    internal = cin // 4
    return {"c1": make_conv_bn(pg, 1, 1, cin, internal),
            "c2": make_conv_bn(pg, 3, 3, internal, internal),
            "c3": make_conv_bn(pg, 1, 1, internal, cout),
            "dil": dilation,
            "act": "relu" if relu else "prelu"}


def make_asym(pg, cin, cout, relu=False):
    internal = cin // 4
    return {"c1": make_conv_bn(pg, 1, 1, cin, internal),
            "c2a": pg.conv(5, 1, internal, internal),
            "c2b": make_conv_bn(pg, 1, 5, internal, internal),
            "c3": make_conv_bn(pg, 1, 1, internal, cout),
            "act": "relu" if relu else "prelu"}


def make_down(pg, cin, cout, relu=False):
    internal = cout // 4
    return {"c1": make_conv_bn(pg, 2, 2, cin, internal),
            "c2": make_conv_bn(pg, 3, 3, internal, internal),
            "c3": make_conv_bn(pg, 1, 1, internal, cout),
            "cin": cin, "cout": cout,
            "act": "relu" if relu else "prelu"}


def make_up(pg, cin, cout, relu=True):
    internal = cin // 4
    return {"main": make_conv_bn(pg, 1, 1, cin, cout),
            "c1": make_conv_bn(pg, 1, 1, cin, internal),
            "tconv": {"w": pg.conv_t(internal, internal, 3, 3), "bn": pg.bn(internal)},
            "c3": make_conv_bn(pg, 1, 1, internal, cout),
            "act": "relu" if relu else "prelu"}


# ----------------------------------------------------------------------------
# Block forward functions (BN + activation + residual fused into matmul epilogue)
# ----------------------------------------------------------------------------
def initial_block_fwd(p, x):
    scale, shift = p["bn"]
    conv = conv2d(x, p["conv"], stride=(2, 2), padding=((1, 1), (1, 1)),
                  scale=scale[:13], shift=shift[:13], act="prelu")
    pool = maxpool2x2(x)
    pool = affine_act(pool, scale[13:], shift[13:], act="prelu")
    return jnp.concatenate([conv, pool], axis=-1)


def regular_fwd(p, x):
    act, d = p["act"], p["dil"]
    e = conv2d(x, p["c1"]["w"], scale=p["c1"]["scale"], shift=p["c1"]["shift"], act=act)
    e = conv2d(e, p["c2"]["w"], padding=((d, d), (d, d)), dilation=(d, d),
               scale=p["c2"]["scale"], shift=p["c2"]["shift"], act=act)
    # c3 (1x1) + BN + residual add + activation, all fused in one kernel.
    return conv2d(e, p["c3"]["w"], scale=p["c3"]["scale"], shift=p["c3"]["shift"],
                  residual=x, act=act)


def asym_fwd(p, x):
    act = p["act"]
    e = conv2d(x, p["c1"]["w"], scale=p["c1"]["scale"], shift=p["c1"]["shift"], act=act)
    e = conv2d(e, p["c2a"], padding=((2, 2), (0, 0)))                       # 5x1
    e = conv2d(e, p["c2b"]["w"], padding=((0, 0), (2, 2)),                  # 1x5
               scale=p["c2b"]["scale"], shift=p["c2b"]["shift"], act=act)
    return conv2d(e, p["c3"]["w"], scale=p["c3"]["scale"], shift=p["c3"]["shift"],
                  residual=x, act=act)


def down_fwd(p, x):
    act = p["act"]
    main, idx = maxpool2x2(x, return_indices=True)
    main = jnp.pad(main, ((0, 0), (0, 0), (0, 0), (0, p["cout"] - p["cin"])))
    e = conv2d(x, p["c1"]["w"], stride=(2, 2),
               scale=p["c1"]["scale"], shift=p["c1"]["shift"], act=act)
    e = conv2d(e, p["c2"]["w"], padding=((1, 1), (1, 1)),
               scale=p["c2"]["scale"], shift=p["c2"]["shift"], act=act)
    out = conv2d(e, p["c3"]["w"], scale=p["c3"]["scale"], shift=p["c3"]["shift"],
                 residual=main, act=act)
    return out, idx


def up_fwd(p, x, idx):
    act = p["act"]
    m = conv2d(x, p["main"]["w"], scale=p["main"]["scale"], shift=p["main"]["shift"])
    m = maxunpool2x2(m, idx)
    e = conv2d(x, p["c1"]["w"], scale=p["c1"]["scale"], shift=p["c1"]["shift"], act=act)
    ts, tb = p["tconv"]["bn"]
    e = conv_transpose2d(e, p["tconv"]["w"], scale=ts, shift=tb, act=act)
    return conv2d(e, p["c3"]["w"], scale=p["c3"]["scale"], shift=p["c3"]["shift"],
                  residual=m, act=act)


# ----------------------------------------------------------------------------
# Full ENet
# ----------------------------------------------------------------------------
def build_enet(out_channels, seed=0):
    pg = ParamGen(seed)
    P = {"init": make_initial_block(pg),
         "b10": make_down(pg, 16, 64),
         "b11": make_regular(pg, 64, 64),
         "b12": make_regular(pg, 64, 64),
         "b13": make_regular(pg, 64, 64),
         "b14": make_regular(pg, 64, 64),
         "b20": make_down(pg, 64, 128),
         "b21": make_regular(pg, 128, 128),
         "b22": make_regular(pg, 128, 128, dilation=2),
         "b23": make_asym(pg, 128, 128),
         "b24": make_regular(pg, 128, 128, dilation=4),
         "b25": make_regular(pg, 128, 128),
         "b26": make_regular(pg, 128, 128, dilation=8),
         "b27": make_asym(pg, 128, 128),
         "b28": make_regular(pg, 128, 128, dilation=16),
         "b31": make_regular(pg, 128, 128),
         "b32": make_regular(pg, 128, 128, dilation=2),
         "b33": make_asym(pg, 128, 128),
         "b34": make_regular(pg, 128, 128, dilation=4),
         "b35": make_regular(pg, 128, 128),
         "b36": make_regular(pg, 128, 128, dilation=8),
         "b37": make_asym(pg, 128, 128),
         "b38": make_regular(pg, 128, 128, dilation=16),
         "b40": make_up(pg, 128, 64, relu=True),
         "b41": make_regular(pg, 64, 64, relu=True),
         "b42": make_regular(pg, 64, 64, relu=True),
         "b50": make_up(pg, 64, 16, relu=True),
         "b51": make_regular(pg, 16, 16, relu=True),
         "fullconv": pg.conv_t(16, out_channels, 3, 3)}
    return P


def enet_forward(P, input_image_nchw):
    x = jnp.transpose(input_image_nchw, (0, 2, 3, 1)).astype(jnp.bfloat16)  # NHWC bf16
    x = initial_block_fwd(P["init"], x)
    x, i1 = down_fwd(P["b10"], x)
    for k in ("b11", "b12", "b13", "b14"):
        x = regular_fwd(P[k], x)
    x, i2 = down_fwd(P["b20"], x)
    x = regular_fwd(P["b21"], x)
    x = regular_fwd(P["b22"], x)
    x = asym_fwd(P["b23"], x)
    x = regular_fwd(P["b24"], x)
    x = regular_fwd(P["b25"], x)
    x = regular_fwd(P["b26"], x)
    x = asym_fwd(P["b27"], x)
    x = regular_fwd(P["b28"], x)
    x = regular_fwd(P["b31"], x)
    x = regular_fwd(P["b32"], x)
    x = asym_fwd(P["b33"], x)
    x = regular_fwd(P["b34"], x)
    x = regular_fwd(P["b35"], x)
    x = regular_fwd(P["b36"], x)
    x = asym_fwd(P["b37"], x)
    x = regular_fwd(P["b38"], x)
    x = up_fwd(P["b40"], x, i2)
    x = regular_fwd(P["b41"], x)
    x = regular_fwd(P["b42"], x)
    x = up_fwd(P["b50"], x, i1)
    x = regular_fwd(P["b51"], x)
    out = conv_transpose2d(x, P["fullconv"], act="sigmoid",
                           out_dtype=jnp.float32)        # fullconv + Sigmoid fused
    return jnp.transpose(out, (0, 3, 1, 2)).astype(jnp.float32)   # back to NCHW


if __name__ == "__main__":
    out_channels = 2
    key = jax.random.PRNGKey(0)
    input_image = jax.random.normal(key, (2, 3, 16, 16), jnp.float32)  # NCHW
    params = build_enet(out_channels, seed=0)
    y = enet_forward(params, input_image)
    y = jax.block_until_ready(y)
    assert y.shape == (2, out_channels, 16, 16), y.shape
    assert bool(jnp.all(jnp.isfinite(y)))
    assert bool(jnp.all((y >= 0.0) & (y <= 1.0)))  # sigmoid output range
    print("KERNEL_OK")
</pallas_src>

<mosaic_0001>
module attributes {stable_mosaic.version = 11 : i64} {
  func.func @_mm_kernel(%arg0: i32, %arg1: i32, %arg2: i32, %arg3: memref<128x128xbf16, #tpu.memory_space<vmem>>, %arg4: memref<128x128xbf16, #tpu.memory_space<vmem>>, %arg5: memref<1x128xf32, #tpu.memory_space<vmem>>, %arg6: memref<1x128xf32, #tpu.memory_space<vmem>>, %arg7: memref<128x128xbf16, #tpu.memory_space<vmem>>, %arg8: memref<128x128xf32, #tpu.memory_space<vmem>>) attributes {dimension_semantics = [#tpu.dimension_semantics<parallel>, #tpu.dimension_semantics<parallel>, #tpu.dimension_semantics<arbitrary>], iteration_bounds = array<i64: 1, 1, 1>, scalar_prefetch = 0 : i64, scratch_operands = 1 : i64, tpu.core_type = #tpu.core_type<tc>, window_params = [{transform_indices = @transform_0, window_bounds = array<i64: 128, 128>}, {transform_indices = @transform_1, window_bounds = array<i64: 128, 128>}, {transform_indices = @transform_2, window_bounds = array<i64: 1, 128>}, {transform_indices = @transform_3, window_bounds = array<i64: 1, 128>}, {transform_indices = @transform_4, window_bounds = array<i64: 128, 128>}]} {
    %c0_i32 = arith.constant 0 : i32
    %0 = arith.cmpi eq, %arg2, %c0_i32 : i32
    %1 = arith.extui %0 : i1 to i32
    %c0_i32_0 = arith.constant 0 : i32
    %2 = arith.cmpi ne, %1, %c0_i32_0 : i32
    scf.if %2 {
      %cst_10 = arith.constant 0.000000e+00 : f32
      %12 = vector.broadcast %cst_10 : f32 to vector<128x128xf32>
      %c0_11 = arith.constant 0 : index
      %c0_12 = arith.constant 0 : index
      %13 = vector.load %arg8[%c0_11, %c0_12] : memref<128x128xf32, #tpu.memory_space<vmem>>, vector<128x128xf32>
      tpu.vector_store %arg8[%c0_11, %c0_12], %12 {strides = array<i32>} : memref<128x128xf32, #tpu.memory_space<vmem>>, vector<128x128xf32>,
    } else {
    }
    %c0 = arith.constant 0 : index
    %c0_1 = arith.constant 0 : index
    %3 = vector.load %arg8[%c0, %c0_1] : memref<128x128xf32, #tpu.memory_space<vmem>>, vector<128x128xf32>
    %c0_2 = arith.constant 0 : index
    %c0_3 = arith.constant 0 : index
    %4 = vector.load %arg3[%c0_2, %c0_3] : memref<128x128xbf16, #tpu.memory_space<vmem>>, vector<128x128xbf16>
    %c0_4 = arith.constant 0 : index
    %c0_5 = arith.constant 0 : index
    %5 = vector.load %arg4[%c0_4, %c0_5] : memref<128x128xbf16, #tpu.memory_space<vmem>>, vector<128x128xbf16>
    %cst = arith.constant dense<0.000000e+00> : vector<128x128xf32>
    %6 = tpu.matmul %4, %5, %cst {dimension_numbers = #tpu.dot_dimension_numbers<[1], [0], [0], [1], [0, 0, 1, 1], [], []>} : vector<128x128xbf16>, vector<128x128xbf16>, vector<128x128xf32> -> vector<128x128xf32>
    %7 = arith.addf %3, %6 : vector<128x128xf32>
    %c0_6 = arith.constant 0 : index
    %c0_7 = arith.constant 0 : index
    %8 = vector.load %arg8[%c0_6, %c0_7] : memref<128x128xf32, #tpu.memory_space<vmem>>, vector<128x128xf32>
    tpu.vector_store %arg8[%c0_6, %c0_7], %7 {strides = array<i32>} : memref<128x128xf32, #tpu.memory_space<vmem>>, vector<128x128xf32>,
    %c0_i32_8 = arith.constant 0 : i32
    %9 = arith.cmpi eq, %arg2, %c0_i32_8 : i32
    %10 = arith.extui %9 : i1 to i32
    %c0_i32_9 = arith.constant 0 : i32
    %11 = arith.cmpi ne, %10, %c0_i32_9 : i32
    scf.if %11 {
      %c0_10 = arith.constant 0 : index
      %c0_11 = arith.constant 0 : index
      %12 = vector.load %arg8[%c0_10, %c0_11] : memref<128x128xf32, #tpu.memory_space<vmem>>, vector<128x128xf32>
      %c0_12 = arith.constant 0 : index
      %c0_13 = arith.constant 0 : index
      %13 = vector.load %arg5[%c0_12, %c0_13] : memref<1x128xf32, #tpu.memory_space<vmem>>, vector<1x128xf32>
      %14 = vector.broadcast %13 : vector<1x128xf32> to vector<128x128xf32>
      %15 = arith.mulf %12, %14 : vector<128x128xf32>
      %c0_14 = arith.constant 0 : index
      %c0_15 = arith.constant 0 : index
      %16 = vector.load %arg6[%c0_14, %c0_15] : memref<1x128xf32, #tpu.memory_space<vmem>>, vector<1x128xf32>
      %17 = vector.broadcast %16 : vector<1x128xf32> to vector<128x128xf32>
      %18 = arith.addf %15, %17 : vector<128x128xf32>
      %cst_16 = arith.constant 0.000000e+00 : f32
      %19 = vector.broadcast %cst_16 : f32 to vector<128x128xf32>
      %20 = arith.cmpf ogt, %18, %19 : vector<128x128xf32>
      %cst_17 = arith.constant 2.500000e-01 : f32
      %21 = vector.broadcast %cst_17 : f32 to vector<128x128xf32>
      %22 = arith.mulf %21, %18 : vector<128x128xf32>
      %23 = arith.select %20, %18, %22 : vector<128x128xi1>, vector<128x128xf32>
      %24 = arith.truncf %23 : vector<128x128xf32> to vector<128x128xbf16>
      %c0_18 = arith.constant 0 : index
      %c0_19 = arith.constant 0 : index
      %25 = vector.load %arg7[%c0_18, %c0_19] : memref<128x128xbf16, #tpu.memory_space<vmem>>, vector<128x128xbf16>
      tpu.vector_store %arg7[%c0_18, %c0_19], %24 {strides = array<i32>} : memref<128x128xbf16, #tpu.memory_space<vmem>>, vector<128x128xbf16>,
    } else {
    }
    return
  }
  func.func @transform_0(%arg0: i32, %arg1: i32, %arg2: i32) -> (i32, i32) {
    %c0_i32 = arith.constant 0 : i32
    return %arg0, %arg2 : i32, i32
  }
  func.func @transform_1(%arg0: i32, %arg1: i32, %arg2: i32) -> (i32, i32) {
    %c0_i32 = arith.constant 0 : i32
    return %arg2, %arg1 : i32, i32
  }
  func.func @transform_2(%arg0: i32, %arg1: i32, %arg2: i32) -> (i32, i32) {
    %c0_i32 = arith.constant 0 : i32
    %c0_i32_0 = arith.constant 0 : i32
    return %c0_i32, %arg1 : i32, i32
  }
  func.func @transform_3(%arg0: i32, %arg1: i32, %arg2: i32) -> (i32, i32) {
    %c0_i32 = arith.constant 0 : i32
    %c0_i32_0 = arith.constant 0 : i32
    return %c0_i32, %arg1 : i32, i32
  }
  func.func @transform_4(%arg0: i32, %arg1: i32, %arg2: i32) -> (i32, i32) {
    %c0_i32 = arith.constant 0 : i32
    return %arg0, %arg1 : i32, i32
  }
}

</mosaic_0001>

<bundles_post_ra>
// kernel: tpu_custom_call.1
= control target key start
LH: loop header
LB: loop body
LE: loop exit
PB: predicated region body
PF: predicated region fallthrough
CT: control target
= control target key end

     0   :  { %9 = vsyncpa [#allocation4], 0  ;;  %s890_s0 = inlined_call_operand.hbm [shape: bf16[128,128], index: 0, kind: input, shape index: {}]   ;;  %s891_s1 = inlined_call_operand.hbm [shape: bf16[128,128], index: 1, kind: input, shape index: {}]   ;;  %s892_s2 = inlined_call_operand.vmem [shape: f32[1,128], index: 2, kind: input, shape index: {}]   ;;  %s893_s3 = inlined_call_operand.vmem [shape: f32[1,128], index: 3, kind: input, shape index: {}]   ;;  %s894_s4 = inlined_call_operand.hbm [shape: bf16[128,128], index: 4, kind: output, shape index: {}]  }
   0x1   :  { %10 = vsyncpa [#allocation7], 0 }
   0x2   :  { %11 = vsyncpa [#allocation5], 0  ;;  %s799_s15 = smov [#allocation3]  }
   0x3   :  { %s17_s16 = sshll.u32 %s799_s15, 4  ;;  %s18_s16 = int_to_ptr.vmem [resolvable:$true] %s17_s16 }
   0x4   :  { %s741_s17 = scalar_lea.vmem %s18_s16, 1024  ;;  %p746_p1 = scmp.lt.s32.totalorder %s18_s16, %s18_s16 }
   0x5   :  { %p742_p0 = scmp.ne.s32.totalorder %s18_s16, %s741_s17  ;;  %p747_p2 = scmp.lt.s32.totalorder %s741_s17, %s741_s17 }
   0x7   :  { %p748_p3 = por %p747_p2, %p746_p1 }
   0x9   :  { %p749_p4 = pnand %p748_p3, %p742_p0 }
   0xb   :  { %752 = shalt.err (!%p749_p4)
}
   0xc   :  { %s800_s18 = smov 64   ;;  %s801_s19 = smov 4  }
   0xd   :  { %23 = dma.hbm_to_vmem [thread:$0]  %s890_s0, 1024, %s18_s16, [#allocation4], %s800_s18, %s800_s18, %s801_s19  }
   0xe   :  { %s802_s22 = smov [#allocation6]  }
   0xf   :  { %s29_s23 = sshll.u32 %s802_s22, 4  ;;  %s30_s23 = int_to_ptr.vmem [resolvable:$true] %s29_s23 }
  0x10   :  { %s761_s24 = scalar_lea.vmem %s30_s23, 1024  ;;  %p766_p6 = scmp.lt.s32.totalorder %s30_s23, %s30_s23 }
  0x11   :  { %p762_p5 = scmp.ne.s32.totalorder %s30_s23, %s761_s24  ;;  %p767_p7 = scmp.lt.s32.totalorder %s761_s24, %s761_s24 }
  0x13   :  { %p768_p8 = por %p767_p7, %p766_p6 }
  0x15   :  { %p769_p9 = pnand %p768_p8, %p762_p5 }
  0x17   :  { %772 = shalt.err (!%p769_p9)
}
  0x18   :  { %35 = dma.hbm_to_vmem [thread:$0]  %s891_s1, 1024, %s30_s23, [#allocation7], %s800_s18, %s800_s18, %s801_s19  }
  0x19   :  { %793 = dma.done.wait [#allocation4], 1024  }
  0x1a   :  { %794 = vsyncadd [#allocation4], 4294966272 }
  0x1b   :  { %795 = dma.done.wait [#allocation7], 1024  }
  0x1c   :  { %796 = vsyncadd [#allocation7], 4294966272  ;;  %v717_v0 = vld [vmem:[#allocation6 + $0x38] sm:$0xff]   ;;  %v718_v1 = vld [vmem:[#allocation6 + $0x30] sm:$0xff]  }
  0x1d   :  { %664 = vmatprep.subr.bf16.mxu0 %v717_v0  ;;  %696 = vmatprep.subr.bf16.mxu1 %v717_v0  ;;  %v719_v2 = vld [vmem:[#allocation6 + $0x28] sm:$0xff]   ;;  %v720_v3 = vld [vmem:[#allocation6 + $0x20] sm:$0xff]   ;;  %v721_v6 = vld [vmem:[#allocation6 + $0x18] sm:$0xff]  }
  0x1e   :  { %665 = vmatpush3.bf16.msra.mxu0 %v717_v0  ;;  %704 = vmatpush3.bf16.msra.mxu1 %v717_v0  ;;  %v725_v4 = vld [vmem:[#allocation3] sm:$0xff]   ;;  %v722_v7 = vld [vmem:[#allocation6 + $0x10] sm:$0xff]   ;;  %v723_v8 = vld [vmem:[#allocation6 + $0x8] sm:$0xff]  }
  0x1f   :  { %666 = vmatprep.subr.bf16.mxu0 %v718_v1  ;;  %697 = vmatprep.subr.bf16.mxu1 %v718_v1  ;;  %v726_v5 = vld [vmem:[#allocation3 + $0x20] sm:$0xff]   ;;  %v727_v10 = vld [vmem:[#allocation3 + $0x8] sm:$0xff]   ;;  %v729_v12 = vld [vmem:[#allocation3 + $0x10] sm:$0xff]  }
  0x20   :  { %680 = vmatprep.mubr.bf16.mxu0 %v725_v4  ;;  %688 = vmatprep.mubr.bf16.mxu1 %v726_v5  ;;  %v724_v9 = vld [vmem:[#allocation6] sm:$0xff]   ;;  %v728_v11 = vld [vmem:[#allocation3 + $0x28] sm:$0xff]   ;;  %v730_v13 = vld [vmem:[#allocation3 + $0x30] sm:$0xff]  }
  0x21   :  { %v731_v14 = vld [vmem:[#allocation3 + $0x18] sm:$0xff]   ;;  %v844_v16 = vld [vmem:[%s892_s2] ss:$0 sm:$0xff]  ;;  %s803_s2 = smov [#allocation8]  }
  0x22   :  { %667 = vmatpush3.bf16.msra.mxu0 %v718_v1  ;;  %705 = vmatpush3.bf16.msra.mxu1 %v718_v1  ;;  %v732_v15 = vld [vmem:[#allocation3 + $0x38] sm:$0xff]   ;;  %v849_v18 = vld [vmem:[%s893_s3] ss:$0 sm:$0xff]  ;;  %s538_s3 = sshll.u32 %s803_s2, 4  ;;  %s539_s3 = int_to_ptr.vmem [resolvable:$true] %s538_s3 }
  0x23   :  { %668 = vmatprep.subr.bf16.mxu0 %v719_v2  ;;  %698 = vmatprep.subr.bf16.mxu1 %v719_v2  ;;  %s773_s29 = scalar_lea.vmem %s539_s3, 1024  ;;  %p778_p11 = scmp.lt.s32.totalorder %s539_s3, %s539_s3 }
  0x24   :  { %p774_p10 = scmp.ne.s32.totalorder %s539_s3, %s773_s29  ;;  %p779_p12 = scmp.lt.s32.totalorder %s773_s29, %s773_s29 }
  0x26   :  { %669 = vmatpush3.bf16.msra.mxu0 %v719_v2  ;;  %706 = vmatpush3.bf16.msra.mxu1 %v719_v2  ;;  %p780_p13 = por %p779_p12, %p778_p11 }
  0x27   :  { %670 = vmatprep.subr.bf16.mxu0 %v720_v3  ;;  %699 = vmatprep.subr.bf16.mxu1 %v720_v3 }
  0x28   :  { %p781_p0 = pnand %p780_p13, %p774_p10 }
  0x2a   :  { %671 = vmatpush3.bf16.msra.mxu0 %v720_v3  ;;  %707 = vmatpush3.bf16.msra.mxu1 %v720_v3 }
  0x2b   :  { %672 = vmatprep.subr.bf16.mxu0 %v721_v6  ;;  %700 = vmatprep.subr.bf16.mxu1 %v721_v6 }
  0x2e   :  { %673 = vmatpush3.bf16.msra.mxu0 %v721_v6  ;;  %708 = vmatpush3.bf16.msra.mxu1 %v721_v6 }
  0x2f   :  { %674 = vmatprep.subr.bf16.mxu0 %v722_v7  ;;  %701 = vmatprep.subr.bf16.mxu1 %v722_v7 }
  0x32   :  { %675 = vmatpush3.bf16.msra.mxu0 %v722_v7  ;;  %709 = vmatpush3.bf16.msra.mxu1 %v722_v7 }
  0x33   :  { %676 = vmatprep.subr.bf16.mxu0 %v723_v8  ;;  %702 = vmatprep.subr.bf16.mxu1 %v723_v8 }
  0x36   :  { %677 = vmatpush3.bf16.msra.mxu0 %v723_v8  ;;  %710 = vmatpush3.bf16.msra.mxu1 %v723_v8 }
  0x37   :  { %678 = vmatprep.subr.bf16.mxu0 %v724_v9  ;;  %703 = vmatprep.subr.bf16.mxu1 %v724_v9 }
  0x3a   :  { %679 = vmatpush3.bf16.msra.mxu0 %v724_v9  ;;  %711 = vmatpush3.bf16.msra.mxu1 %v724_v9 }
  0x3d   :  { %681 = vmatmul.mubr.bf16.vlgmr.msra.gmra.mxu0 %v727_v10  ;;  %689 = vmatmul.mubr.bf16.vlgmr.msra.gmra.mxu1 %v728_v11 }
  0x3e   :  { %684 = vmatprep.mubr.bf16.mxu0 %v729_v12  ;;  %692 = vmatprep.mubr.bf16.mxu1 %v730_v13 }
  0x45   :  { %685 = vmatmul.mubr.bf16.gmra.mxu0 %v731_v14  ;;  %693 = vmatmul.mubr.bf16.gmra.mxu1 %v732_v15 }
  0xfd   :  { %v682_v17 = vpop.f32.mrf.mxu0  ;;  %v690_v19 = vpop.f32.mrf.mxu1 }
  0xfe   :  { %v368_v20 = vmul.f32 %v682_v17, %v844_v16  ;;  %v376_v21 = vmul.f32 %v690_v19, %v844_v16 }
  0xff   :  { %v245_v22 = vpop.f32.mrf.mxu0  ;;  %v277_v23 = vpop.f32.mrf.mxu1 }
 0x100   :  { %v391_v24 = vadd.f32 %v849_v18, %v368_v20  ;;  %v399_v25 = vadd.f32 %v849_v18, %v376_v21  ;;  %v366_v26 = vmul.f32 %v844_v16, %v245_v22  ;;  %v374_v27 = vmul.f32 %v844_v16, %v277_v23 }
 0x101   :  { %v683_v28 = vpop.f32.mrf.mxu0  ;;  %v691_v29 = vpop.f32.mrf.mxu1 }
 0x102   :  { %vm407_vm0 = vcmp.gt.f32.partialorder %v391_v24, 0.0  ;;  %v423_v30 = vmul.f32 0.25, %v391_v24  ;;  %vm415_vm1 = vcmp.gt.f32.partialorder %v399_v25, 0.0  ;;  %v431_v31 = vmul.f32 0.25, %v399_v25 }
 0x103   :  { %v389_v32 = vadd.f32 %v849_v18, %v366_v26  ;;  %v397_v33 = vadd.f32 %v849_v18, %v374_v27  ;;  %v369_v34 = vmul.f32 %v683_v28, %v844_v16  ;;  %v377_v35 = vmul.f32 %v691_v29, %v844_v16  ;;  %v248_v36 = vpop.f32.mrf.mxu0  ;;  %v280_v37 = vpop.f32.mrf.mxu1 }
 0x104   :  { %v439_v38 = vsel %vm407_vm0, %v391_v24, %v423_v30  ;;  %v447_v39 = vsel %vm415_vm1, %v399_v25, %v431_v31  ;;  %v367_v40 = vmul.f32 %v844_v16, %v248_v36  ;;  %v375_v41 = vmul.f32 %v844_v16, %v280_v37 }
 0x105   :  { %vm405_vm2 = vcmp.gt.f32.partialorder %v389_v32, 0.0  ;;  %v421_v42 = vmul.f32 0.25, %v389_v32  ;;  %vm413_vm3 = vcmp.gt.f32.partialorder %v397_v33, 0.0  ;;  %v429_v43 = vmul.f32 0.25, %v397_v33  ;;  %v686_v44 = vpop.f32.mrf.mxu0  ;;  %v694_v45 = vpop.f32.mrf.mxu1 }
 0x106   :  { %v392_v46 = vadd.f32 %v849_v18, %v369_v34  ;;  %v400_v47 = vadd.f32 %v849_v18, %v377_v35  ;;  %v390_v48 = vadd.f32 %v849_v18, %v367_v40  ;;  %v398_v49 = vadd.f32 %v849_v18, %v375_v41 }
 0x107   :  { %v437_v50 = vsel %vm405_vm2, %v389_v32, %v421_v42  ;;  %v445_v51 = vsel %vm413_vm3, %v397_v33, %v429_v43  ;;  %v372_v52 = vmul.f32 %v686_v44, %v844_v16  ;;  %v380_v53 = vmul.f32 %v694_v45, %v844_v16  ;;  %v261_v54 = vpop.f32.mrf.mxu0  ;;  %v293_v55 = vpop.f32.mrf.mxu1 }
 0x108   :  { %vm408_vm4 = vcmp.gt.f32.partialorder %v392_v46, 0.0  ;;  %v424_v56 = vmul.f32 0.25, %v392_v46  ;;  %vm416_vm5 = vcmp.gt.f32.partialorder %v400_v47, 0.0  ;;  %v432_v57 = vmul.f32 0.25, %v400_v47 }
 0x109   :  { %vm406_vm6 = vcmp.gt.f32.partialorder %v390_v48, 0.0  ;;  %v422_v58 = vmul.f32 0.25, %v390_v48  ;;  %vm414_vm7 = vcmp.gt.f32.partialorder %v398_v49, 0.0  ;;  %v430_v59 = vmul.f32 0.25, %v398_v49  ;;  %v687_v60 = vpop.f32.mrf.mxu0  ;;  %v695_v61 = vpop.f32.mrf.mxu1 }
 0x10a   :  { %v440_v62 = vsel %vm408_vm4, %v392_v46, %v424_v56  ;;  %v448_v63 = vsel %vm416_vm5, %v400_v47, %v432_v57  ;;  %v395_v0 = vadd.f32 %v849_v18, %v372_v52  ;;  %v403_v1 = vadd.f32 %v849_v18, %v380_v53 }
 0x10b   :  { %v609_v2 = vpack.c.bf16 %v440_v62, %v439_v38  ;;  %v629_v3 = vpack.c.bf16 %v448_v63, %v447_v39  ;;  %v438_v4 = vsel %vm406_vm6, %v390_v48, %v422_v58  ;;  %v446_v5 = vsel %vm414_vm7, %v398_v49, %v430_v59  ;;  %v264_v6 = vpop.f32.mrf.mxu0  ;;  %v296_v12 = vpop.f32.mrf.mxu1 }
 0x10c   :  { %v604_v7 = vpack.c.bf16 %v438_v4, %v437_v50  ;;  %v624_v8 = vpack.c.bf16 %v446_v5, %v445_v51  ;;  %v427_v9 = vmul.f32 0.25, %v395_v0  ;;  %v370_v10 = vmul.f32 %v844_v16, %v261_v54 }
 0x10d   :  { %641 = vst [vmem:[#allocation8 + $0x8] sm:$0xff] %v609_v2   ;;  %645 = vst [vmem:[#allocation8 + $0x28] sm:$0xff] %v629_v3   ;;  %v378_v11 = vmul.f32 %v844_v16, %v293_v55  ;;  %vm411_vm8 = vcmp.gt.f32.partialorder %v395_v0, 0.0  ;;  %v373_v13 = vmul.f32 %v687_v60, %v844_v16  ;;  %v381_v14 = vmul.f32 %v695_v61, %v844_v16 }
 0x10e   :  { %605 = vst [vmem:[#allocation8] sm:$0xff] %v604_v7   ;;  %644 = vst [vmem:[#allocation8 + $0x20] sm:$0xff] %v624_v8   ;;  %v371_v15 = vmul.f32 %v844_v16, %v264_v6  ;;  %vm419_vm9 = vcmp.gt.f32.partialorder %v403_v1, 0.0  ;;  %v435_v17 = vmul.f32 0.25, %v403_v1  ;;  %v393_v19 = vadd.f32 %v849_v18, %v370_v10 }
 0x10f   :  { %v401_v20 = vadd.f32 %v849_v18, %v378_v11  ;;  %v396_v21 = vadd.f32 %v849_v18, %v373_v13  ;;  %v404_v22 = vadd.f32 %v849_v18, %v381_v14  ;;  %v379_v24 = vmul.f32 %v844_v16, %v296_v12 }
 0x110   :  { %v394_v23 = vadd.f32 %v849_v18, %v371_v15  ;;  %v443_v25 = vsel %vm411_vm8, %v395_v0, %v427_v9  ;;  %vm409_vm10 = vcmp.gt.f32.partialorder %v393_v19, 0.0  ;;  %v425_v26 = vmul.f32 0.25, %v393_v19 }
 0x111   :  { %vm412_vm11 = vcmp.gt.f32.partialorder %v396_v21, 0.0  ;;  %v428_v27 = vmul.f32 0.25, %v396_v21  ;;  %vm420_vm12 = vcmp.gt.f32.partialorder %v404_v22, 0.0  ;;  %v436_v28 = vmul.f32 0.25, %v404_v22 }
 0x112   :  { %v451_v29 = vsel %vm419_vm9, %v403_v1, %v435_v17  ;;  %vm417_vm13 = vcmp.gt.f32.partialorder %v401_v20, 0.0  ;;  %vm410_vm14 = vcmp.gt.f32.partialorder %v394_v23, 0.0  ;;  %v426_v30 = vmul.f32 0.25, %v394_v23 }
 0x113   :  { %v433_v31 = vmul.f32 0.25, %v401_v20  ;;  %v444_v32 = vsel %vm412_vm11, %v396_v21, %v428_v27  ;;  %v452_v33 = vsel %vm420_vm12, %v404_v22, %v436_v28  ;;  %v402_v34 = vadd.f32 %v849_v18, %v379_v24 }
 0x114   :  { %v441_v35 = vsel %vm409_vm10, %v393_v19, %v425_v26  ;;  %v619_v36 = vpack.c.bf16 %v444_v32, %v443_v25  ;;  %v639_v37 = vpack.c.bf16 %v452_v33, %v451_v29  ;;  %v442_v16 = vsel %vm410_vm14, %v394_v23, %v426_v30 }
 0x115   :  { %v614_v38 = vpack.c.bf16 %v442_v16, %v441_v35  ;;  %vm418_vm15 = vcmp.gt.f32.partialorder %v402_v34, 0.0  ;;  %v434_v39 = vmul.f32 0.25, %v402_v34  ;;  %v449_v40 = vsel %vm417_vm13, %v401_v20, %v433_v31 }
 0x116   :  { %643 = vst [vmem:[#allocation8 + $0x18] sm:$0xff] %v619_v36   ;;  %647 = vst [vmem:[#allocation8 + $0x38] sm:$0xff] %v639_v37  }
 0x117   :  { %642 = vst [vmem:[#allocation8 + $0x10] sm:$0xff] %v614_v38   ;;  %v450_v41 = vsel %vm418_vm15, %v402_v34, %v434_v39 }
 0x118   :  { %v634_v42 = vpack.c.bf16 %v450_v41, %v449_v40 }
 0x11a   :  { %646 = vst [vmem:[#allocation8 + $0x30] sm:$0xff] %v634_v42  }
 0x11b   :  { %784 = shalt.err (!%p781_p0)
}
 0x11c   :  { %544 = dma.vmem_to_hbm [thread:$0]  %s539_s3, 1024, %s894_s4, [#allocation5], %s800_s18, %s800_s18, %s801_s19  }
 0x11d   :  { %797 = dma.done.wait [#allocation5], 1024  }
 0x11e   :  { %798 = vsyncadd [#allocation5], 4294966272 }
 0x11f   :  { %548 = vsyncpa [#allocation4], 1 }
 0x120   :  { %549 = vsyncpa [#allocation7], 1 }
 0x121   :  { %550 = vsyncpa [#allocation5], 1 }

</bundles_post_ra>
